<compile_context>
chip_gen: v6e
topology: v6e:2x2x1
jax: 0.10.0
libtpu: 0.0.40
codegen_flags: <defaults>
</compile_context>

<pallas_src>
import jax
import jax.numpy as jnp
from jax.experimental import pallas as pl
from jax.experimental.pallas import tpu as pltpu

EPS_GEN = 1e-7   # GENConv message epsilon
BN_EPS = 1e-5    # BatchNorm1d epsilon


# ----------------------------------------------------------------------------
# Fused kernel
# ----------------------------------------------------------------------------
def _genblock_kernel(a_ref, xf_ref, xt_ref, wt_ref, scale_ref, shift_ref,
                     o_ref, rhs_ref):
    """Fused GENBlock for one tile of destination nodes.

    a:     (tile_n, N)   bf16 aggregation adjacency rows, a[i, j] = 1 iff j -> i
    xf:    (N, Fin)      f32 full node features (all sources)
    xt:    (tile_n, Fin) f32 node features of this destination tile (root add)
    wt:    (Fin, Fout)   bf16 pre-transposed Linear weight
    scale: (1, Fout)     f32 folded eval-BN scale
    shift: (1, Fout)     f32 folded (bias + eval-BN) shift
    o:     (tile_n, Fout) f32
    rhs:   (N, 2*Fin)    bf16 persistent scratch: [e*msg | e]
    """
    fin = xf_ref.shape[1]

    # Build the merged softmax-aggregation RHS once; reused by every dest tile.
    @pl.when(pl.program_id(0) == 0)
    def _build_rhs():
        x = xf_ref[...]                                    # f32 elementwise path
        msg = jnp.maximum(x, 0.0) + EPS_GEN                # relu(x_j) + eps
        # Per-feature global max shift: softmax-invariant (cancels in num/den),
        # keeps exp() bounded.
        col_max = jnp.max(msg, axis=0, keepdims=True)
        e = jnp.exp(msg - col_max)
        rhs_ref[:, :fin] = (e * msg).astype(rhs_ref.dtype)  # numerator half
        rhs_ref[:, fin:] = e.astype(rhs_ref.dtype)          # denominator half

    # Merged numerator/denominator aggregation: one bf16 MXU pass, f32 acc.
    agg = jnp.dot(a_ref[...], rhs_ref[...], preferred_element_type=jnp.float32)
    num = agg[:, :fin]
    den = agg[:, fin:]
    pos = den > 0.0
    inv = pl.reciprocal(jnp.where(pos, den, 1.0), approx=True)   # EUP slot
    aggr = jnp.where(pos, num * inv, 0.0)                        # isolated -> 0

    # Root (x_i) add for this destination-node tile.
    h = aggr + xt_ref[...]

    # Linear (bf16 MXU, f32 acc) + folded bias / eval-BN + ReLU (dropout = id).
    y = jnp.dot(h.astype(wt_ref.dtype), wt_ref[...],
                preferred_element_type=jnp.float32)
    y = y * scale_ref[...] + shift_ref[...]
    o_ref[...] = jnp.maximum(y, 0.0)


# ----------------------------------------------------------------------------
# One-time parameter folding
# ----------------------------------------------------------------------------
def prepare_genblock_params(w, b, do_bn, *, bn_gamma=None, bn_beta=None,
                            bn_mean=None, bn_var=None, dot_dtype=jnp.bfloat16):
    """Fold Linear weight/bias and eval-mode BatchNorm1d into (wt, scale, shift).

    Done ONCE at parameter-prep time (no per-call transposes / folding).
    Supports trained BN running stats / affine params; defaults reproduce
    fresh stats (mean=0, var=1, gamma=1, beta=0).  Weight is stored transposed
    in bf16 so the MXU gets native-precision operands and DMA traffic halves.
    """
    fout = w.shape[0]
    w = jnp.asarray(w, jnp.float32)
    b = jnp.asarray(b, jnp.float32)
    if do_bn:
        gamma = jnp.ones((fout,), jnp.float32) if bn_gamma is None else jnp.asarray(bn_gamma, jnp.float32)
        beta = jnp.zeros((fout,), jnp.float32) if bn_beta is None else jnp.asarray(bn_beta, jnp.float32)
        mean = jnp.zeros((fout,), jnp.float32) if bn_mean is None else jnp.asarray(bn_mean, jnp.float32)
        var = jnp.ones((fout,), jnp.float32) if bn_var is None else jnp.asarray(bn_var, jnp.float32)
        s = gamma / jnp.sqrt(var + BN_EPS)
        scale = s
        shift = (b - mean) * s + beta
    else:
        scale = jnp.ones((fout,), jnp.float32)
        shift = b
    wt = w.T.astype(dot_dtype)                               # (Fin, Fout)
    return wt, scale.reshape(1, fout), shift.reshape(1, fout)


def _default_tile_n(n):
    """Destination-axis tile: a single block (grid=(1,)) unless the graph is
    large enough that the (tile_n, N) adjacency slab needs bounding."""
    if n <= 512:
        return n
    for t in (512, 256, 128):
        if n % t == 0:
            return t
    return n


# ----------------------------------------------------------------------------
# Wrapper
# ----------------------------------------------------------------------------
def genblock_forward(a_agg, x, wt, scale, shift, *, tile_n=None):
    n, fin = x.shape
    fout = wt.shape[1]
    if tile_n is None:
        tile_n = _default_tile_n(n)
    assert n % tile_n == 0
    grid = (n // tile_n,)

    if a_agg.dtype != wt.dtype:                 # adjacency is exact 0/1 in bf16
        a_agg = a_agg.astype(wt.dtype)

    cost = pl.CostEstimate(
        flops=int(2 * n * n * (2 * fin) + 2 * n * fin * fout),
        transcendentals=int(2 * n * fin),       # exp + approx reciprocal
        bytes_accessed=int(a_agg.size * a_agg.dtype.itemsize
                           + 2 * x.size * 4
                           + wt.size * wt.dtype.itemsize
                           + 2 * fout * 4
                           + n * fout * 4),
    )

    return pl.pallas_call(
        _genblock_kernel,
        grid=grid,
        in_specs=[
            pl.BlockSpec((tile_n, n), lambda i: (i, 0)),     # adjacency rows (dst tile)
            pl.BlockSpec((n, fin), lambda i: (0, 0)),        # full x (all sources)
            pl.BlockSpec((tile_n, fin), lambda i: (i, 0)),   # x rows for root add
            pl.BlockSpec((fin, fout), lambda i: (0, 0)),     # pre-transposed weight
            pl.BlockSpec((1, fout), lambda i: (0, 0)),       # folded scale
            pl.BlockSpec((1, fout), lambda i: (0, 0)),       # folded shift
        ],
        out_specs=pl.BlockSpec((tile_n, fout), lambda i: (i, 0)),
        out_shape=jax.ShapeDtypeStruct((n, fout), jnp.float32),
        scratch_shapes=[pltpu.VMEM((n, 2 * fin), wt.dtype)], # persistent [e*msg|e]
        compiler_params=pltpu.CompilerParams(
            # "arbitrary": the rhs scratch built at step 0 is reused by later
            # destination tiles, so the axis must run sequentially.
            dimension_semantics=("arbitrary",),
            vmem_limit_bytes=32 << 20,
        ),
        cost_estimate=cost,
    )(a_agg, x, x, wt, scale, shift)


# ----------------------------------------------------------------------------
# Pure-JAX reference (for correctness check)
# ----------------------------------------------------------------------------
def genblock_reference(a_agg, x, w, b, do_bn, *, bn_gamma=None, bn_beta=None,
                       bn_mean=None, bn_var=None, dot_dtype=jnp.float32):
    a = a_agg.astype(dot_dtype)
    msg = jnp.maximum(x, 0.0) + EPS_GEN
    col_max = jnp.max(msg, axis=0, keepdims=True)
    e = jnp.exp(msg - col_max)
    num = jnp.dot(a, (e * msg).astype(dot_dtype), preferred_element_type=jnp.float32)
    den = jnp.dot(a, e.astype(dot_dtype), preferred_element_type=jnp.float32)
    aggr = jnp.where(den > 0.0, num / jnp.where(den > 0.0, den, 1.0), 0.0)
    h = aggr + x
    y = jnp.dot(h.astype(dot_dtype), w.T.astype(dot_dtype),
                preferred_element_type=jnp.float32) + b
    if do_bn:
        fout = w.shape[0]
        gamma = jnp.ones((fout,), jnp.float32) if bn_gamma is None else bn_gamma
        beta = jnp.zeros((fout,), jnp.float32) if bn_beta is None else bn_beta
        mean = jnp.zeros((fout,), jnp.float32) if bn_mean is None else bn_mean
        var = jnp.ones((fout,), jnp.float32) if bn_var is None else bn_var
        y = (y - mean) / jnp.sqrt(var + BN_EPS) * gamma + beta
    return jnp.maximum(y, 0.0)                                # ReLU; dropout = id


# ----------------------------------------------------------------------------
if __name__ == "__main__":
    key = jax.random.PRNGKey(0)
    N = 64                 # graph nodes
    in_features = 64
    out_features = 128     # lane-dense output (multiple of 128)
    n_edges = 256
    do_bn = True
    dropout_p = 0.1        # eval mode -> identity

    k_x, k_s, k_d, k_w, k_b = jax.random.split(key, 5)
    x = jax.random.normal(k_x, (N, in_features), jnp.float32)
    src = jax.random.randint(k_s, (n_edges,), 0, N, dtype=jnp.int32)
    dst = jax.random.randint(k_d, (n_edges,), 0, N, dtype=jnp.int32)

    # Dense aggregation adjacency built directly in bf16 (0/1 is exact):
    # a_agg[i, j] = 1 iff there is an edge j -> i.
    # NOTE: .set(1.0) deduplicates parallel edges; PyG softmax aggregation
    # would count duplicates separately (only matters for multigraphs).
    a_agg = jnp.zeros((N, N), jnp.bfloat16).at[dst, src].set(1.0)

    # PyTorch-Linear-style init for GENConv's single Linear.
    bound = 1.0 / (in_features ** 0.5)
    w = jax.random.uniform(k_w, (out_features, in_features), jnp.float32, -bound, bound)
    b = jax.random.uniform(k_b, (out_features,), jnp.float32, -bound, bound)

    # TODO(synk): training-mode Dropout / batch-statistics BN not implemented
    # (eval-mode semantics: dropout = identity, BN folded from running stats).
    wt, scale, shift = prepare_genblock_params(w, b, do_bn)
    out = jax.block_until_ready(genblock_forward(a_agg, x, wt, scale, shift))

    assert out.shape == (N, out_features), out.shape
    assert bool(jnp.all(jnp.isfinite(out)))

    # Check 1: reference with the same bf16-at-the-dots numerics (tight-ish;
    # remaining slack covers the EUP approx reciprocal + accumulation order).
    ref_bf16 = genblock_reference(a_agg, x, w, b, do_bn, dot_dtype=jnp.bfloat16)
    assert bool(jnp.allclose(out, ref_bf16, rtol=2e-2, atol=2e-2)), \
        float(jnp.max(jnp.abs(out - ref_bf16)))
    # Check 2: full-f32 reference (looser: bf16 MXU operands + approx recip).
    ref_f32 = genblock_reference(a_agg, x, w, b, do_bn, dot_dtype=jnp.float32)
    assert bool(jnp.allclose(out, ref_f32, rtol=5e-2, atol=5e-2)), \
        float(jnp.max(jnp.abs(out - ref_f32)))
    print("KERNEL_OK")
</pallas_src>

<mosaic_0001>
module attributes {stable_mosaic.version = 11 : i64} {
  func.func @_genblock_kernel(%arg0: i32, %arg1: memref<64x64xbf16, #tpu.memory_space<vmem>>, %arg2: memref<64x64xf32, #tpu.memory_space<vmem>>, %arg3: memref<64x64xf32, #tpu.memory_space<vmem>>, %arg4: memref<64x128xbf16, #tpu.memory_space<vmem>>, %arg5: memref<1x128xf32, #tpu.memory_space<vmem>>, %arg6: memref<1x128xf32, #tpu.memory_space<vmem>>, %arg7: memref<64x128xf32, #tpu.memory_space<vmem>>, %arg8: memref<64x128xbf16, #tpu.memory_space<vmem>>) attributes {dimension_semantics = [#tpu.dimension_semantics<arbitrary>], iteration_bounds = array<i64: 1>, scalar_prefetch = 0 : i64, scratch_operands = 1 : i64, tpu.core_type = #tpu.core_type<tc>, window_params = [{transform_indices = @transform_0, window_bounds = array<i64: 64, 64>}, {pipeline_mode = #tpu.pipeline_mode<synchronous>, transform_indices = @transform_1, window_bounds = array<i64: 64, 64>}, {transform_indices = @transform_2, window_bounds = array<i64: 64, 64>}, {pipeline_mode = #tpu.pipeline_mode<synchronous>, transform_indices = @transform_3, window_bounds = array<i64: 64, 128>}, {pipeline_mode = #tpu.pipeline_mode<synchronous>, transform_indices = @transform_4, window_bounds = array<i64: 1, 128>}, {pipeline_mode = #tpu.pipeline_mode<synchronous>, transform_indices = @transform_5, window_bounds = array<i64: 1, 128>}, {transform_indices = @transform_6, window_bounds = array<i64: 64, 128>}]} {
    %c0_i32 = arith.constant 0 : i32
    %0 = arith.cmpi eq, %arg0, %c0_i32 : i32
    %1 = arith.extui %0 : i1 to i32
    %c0_i32_0 = arith.constant 0 : i32
    %2 = arith.cmpi ne, %1, %c0_i32_0 : i32
    scf.if %2 {
      %c0_19 = arith.constant 0 : index
      %c0_20 = arith.constant 0 : index
      %30 = vector.load %arg2[%c0_19, %c0_20] : memref<64x64xf32, #tpu.memory_space<vmem>>, vector<64x64xf32>
      %cst_21 = arith.constant 0.000000e+00 : f32
      %31 = vector.broadcast %cst_21 : f32 to vector<64x64xf32>
      %32 = arith.maximumf %30, %31 : vector<64x64xf32>
      %cst_22 = arith.constant 1.000000e-07 : f32
      %33 = vector.broadcast %cst_22 : f32 to vector<64x64xf32>
      %34 = arith.addf %32, %33 : vector<64x64xf32>
      %cst_23 = arith.constant dense<0xFF800000> : vector<64xf32>
      %35 = vector.multi_reduction <maximumf>, %34, %cst_23 [0] : vector<64x64xf32> to vector<64xf32>
      %36 = vector.shape_cast %35 : vector<64xf32> to vector<1x64xf32>
      %37 = vector.broadcast %36 : vector<1x64xf32> to vector<64x64xf32>
      %38 = arith.subf %34, %37 : vector<64x64xf32>
      %39 = math.exp %38 : vector<64x64xf32>
      %40 = arith.mulf %39, %34 : vector<64x64xf32>
      %41 = arith.truncf %40 : vector<64x64xf32> to vector<64x64xbf16>
      %c0_24 = arith.constant 0 : index
      %c0_25 = arith.constant 0 : index
      %42 = vector.load %arg8[%c0_24, %c0_25] : memref<64x128xbf16, #tpu.memory_space<vmem>>, vector<64x64xbf16>
      tpu.vector_store %arg8[%c0_24, %c0_25], %41 {strides = array<i32>} : memref<64x128xbf16, #tpu.memory_space<vmem>>, vector<64x64xbf16>,
      %43 = arith.truncf %39 : vector<64x64xf32> to vector<64x64xbf16>
      %c0_26 = arith.constant 0 : index
      %c64 = arith.constant 64 : index
      %44 = vector.load %arg8[%c0_26, %c64] : memref<64x128xbf16, #tpu.memory_space<vmem>>, vector<64x64xbf16>
      tpu.vector_store %arg8[%c0_26, %c64], %43 {strides = array<i32>} : memref<64x128xbf16, #tpu.memory_space<vmem>>, vector<64x64xbf16>,
    } else {
    }
    %c0 = arith.constant 0 : index
    %c0_1 = arith.constant 0 : index
    %3 = vector.load %arg1[%c0, %c0_1] : memref<64x64xbf16, #tpu.memory_space<vmem>>, vector<64x64xbf16>
    %c0_2 = arith.constant 0 : index
    %c0_3 = arith.constant 0 : index
    %4 = vector.load %arg8[%c0_2, %c0_3] : memref<64x128xbf16, #tpu.memory_space<vmem>>, vector<64x128xbf16>
    %cst = arith.constant dense<0.000000e+00> : vector<64x128xf32>
    %5 = tpu.matmul %3, %4, %cst {dimension_numbers = #tpu.dot_dimension_numbers<[1], [0], [0], [1], [0, 0, 1, 1], [], []>} : vector<64x64xbf16>, vector<64x128xbf16>, vector<64x128xf32> -> vector<64x128xf32>
    %6 = vector.extract_strided_slice %5 {offsets = [0, 0], sizes = [64, 64], strides = [1, 1]} : vector<64x128xf32> to vector<64x64xf32>
    %7 = vector.extract_strided_slice %5 {offsets = [0, 64], sizes = [64, 64], strides = [1, 1]} : vector<64x128xf32> to vector<64x64xf32>
    %cst_4 = arith.constant 0.000000e+00 : f32
    %8 = vector.broadcast %cst_4 : f32 to vector<64x64xf32>
    %9 = arith.cmpf ogt, %7, %8 : vector<64x64xf32>
    %cst_5 = arith.constant 1.000000e+00 : f32
    %10 = vector.broadcast %cst_5 : f32 to vector<64x64xf32>
    %11 = arith.select %9, %7, %10 : vector<64x64xi1>, vector<64x64xf32>
    %12 = tpu.reciprocal %11 {approx = true} : vector<64x64xf32> -> vector<64x64xf32>
    %13 = arith.mulf %6, %12 : vector<64x64xf32>
    %cst_6 = arith.constant 0.000000e+00 : f32
    %14 = vector.broadcast %cst_6 : f32 to vector<64x64xf32>
    %15 = arith.select %9, %13, %14 : vector<64x64xi1>, vector<64x64xf32>
    %c0_7 = arith.constant 0 : index
    %c0_8 = arith.constant 0 : index
    %16 = vector.load %arg3[%c0_7, %c0_8] : memref<64x64xf32, #tpu.memory_space<vmem>>, vector<64x64xf32>
    %17 = arith.addf %15, %16 : vector<64x64xf32>
    %18 = arith.truncf %17 : vector<64x64xf32> to vector<64x64xbf16>
    %c0_9 = arith.constant 0 : index
    %c0_10 = arith.constant 0 : index
    %19 = vector.load %arg4[%c0_9, %c0_10] : memref<64x128xbf16, #tpu.memory_space<vmem>>, vector<64x128xbf16>
    %cst_11 = arith.constant dense<0.000000e+00> : vector<64x128xf32>
    %20 = tpu.matmul %18, %19, %cst_11 {dimension_numbers = #tpu.dot_dimension_numbers<[1], [0], [0], [1], [0, 0, 1, 1], [], []>} : vector<64x64xbf16>, vector<64x128xbf16>, vector<64x128xf32> -> vector<64x128xf32>
    %c0_12 = arith.constant 0 : index
    %c0_13 = arith.constant 0 : index
    %21 = vector.load %arg5[%c0_12, %c0_13] : memref<1x128xf32, #tpu.memory_space<vmem>>, vector<1x128xf32>
    %22 = vector.broadcast %21 : vector<1x128xf32> to vector<64x128xf32>
    %23 = arith.mulf %20, %22 : vector<64x128xf32>
    %c0_14 = arith.constant 0 : index
    %c0_15 = arith.constant 0 : index
    %24 = vector.load %arg6[%c0_14, %c0_15] : memref<1x128xf32, #tpu.memory_space<vmem>>, vector<1x128xf32>
    %25 = vector.broadcast %24 : vector<1x128xf32> to vector<64x128xf32>
    %26 = arith.addf %23, %25 : vector<64x128xf32>
    %cst_16 = arith.constant 0.000000e+00 : f32
    %27 = vector.broadcast %cst_16 : f32 to vector<64x128xf32>
    %28 = arith.maximumf %26, %27 : vector<64x128xf32>
    %c0_17 = arith.constant 0 : index
    %c0_18 = arith.constant 0 : index
    %29 = vector.load %arg7[%c0_17, %c0_18] : memref<64x128xf32, #tpu.memory_space<vmem>>, vector<64x128xf32>
    tpu.vector_store %arg7[%c0_17, %c0_18], %28 {strides = array<i32>} : memref<64x128xf32, #tpu.memory_space<vmem>>, vector<64x128xf32>,
    return
  }
  func.func @transform_0(%arg0: i32) -> (i32, i32) {
    %c0_i32 = arith.constant 0 : i32
    %c0_i32_0 = arith.constant 0 : i32
    return %arg0, %c0_i32 : i32, i32
  }
  func.func @transform_1(%arg0: i32) -> (i32, i32) {
    %c0_i32 = arith.constant 0 : i32
    %c0_i32_0 = arith.constant 0 : i32
    %c0_i32_1 = arith.constant 0 : i32
    return %c0_i32, %c0_i32_0 : i32, i32
  }
  func.func @transform_2(%arg0: i32) -> (i32, i32) {
    %c0_i32 = arith.constant 0 : i32
    %c0_i32_0 = arith.constant 0 : i32
    return %arg0, %c0_i32 : i32, i32
  }
  func.func @transform_3(%arg0: i32) -> (i32, i32) {
    %c0_i32 = arith.constant 0 : i32
    %c0_i32_0 = arith.constant 0 : i32
    %c0_i32_1 = arith.constant 0 : i32
    return %c0_i32, %c0_i32_0 : i32, i32
  }
  func.func @transform_4(%arg0: i32) -> (i32, i32) {
    %c0_i32 = arith.constant 0 : i32
    %c0_i32_0 = arith.constant 0 : i32
    %c0_i32_1 = arith.constant 0 : i32
    return %c0_i32, %c0_i32_0 : i32, i32
  }
  func.func @transform_5(%arg0: i32) -> (i32, i32) {
    %c0_i32 = arith.constant 0 : i32
    %c0_i32_0 = arith.constant 0 : i32
    %c0_i32_1 = arith.constant 0 : i32
    return %c0_i32, %c0_i32_0 : i32, i32
  }
  func.func @transform_6(%arg0: i32) -> (i32, i32) {
    %c0_i32 = arith.constant 0 : i32
    %c0_i32_0 = arith.constant 0 : i32
    return %arg0, %c0_i32 : i32, i32
  }
}

</mosaic_0001>

<bundles_post_ra>
// kernel: tpu_custom_call.1
= control target key start
LH: loop header
LB: loop body
LE: loop exit
PB: predicated region body
PF: predicated region fallthrough
CT: control target
= control target key end

     0   :  { %11 = vsyncpa [#allocation4], 0  ;;  %s1246_s0 = inlined_call_operand.hbm [shape: bf16[64,64], index: 0, kind: input, shape index: {}]   ;;  %s1247_s1 = inlined_call_operand.hbm [shape: f32[64,64], index: 1, kind: input, shape index: {}]   ;;  %s1248_s2 = inlined_call_operand.hbm [shape: f32[64,64], index: 2, kind: input, shape index: {}]   ;;  %s1249_s3 = inlined_call_operand.hbm [shape: bf16[64,128], index: 3, kind: input, shape index: {}]   ;;  %s1250_s4 = inlined_call_operand.vmem [shape: f32[1,128], index: 4, kind: input, shape index: {}]   ;;  %s1251_s5 = inlined_call_operand.vmem [shape: f32[1,128], index: 5, kind: input, shape index: {}]   ;;  %s1252_s6 = inlined_call_operand.hbm [shape: f32[64,128], index: 6, kind: output, shape index: {}]  }
   0x1   :  { %12 = vsyncpa [#allocation7], 0 }
   0x2   :  { %13 = vsyncpa [#allocation10], 0 }
   0x3   :  { %14 = vsyncpa [#allocation5], 0  ;;  %s1003_s21 = smov [#allocation6]  }
   0x4   :  { %s32_s22 = sshll.u32 %s1003_s21, 4  ;;  %s33_s22 = int_to_ptr.vmem [resolvable:$true] %s32_s22 }
   0x5   :  { %s903_s23 = scalar_lea.vmem %s33_s22, 1024  ;;  %p908_p1 = scmp.lt.s32.totalorder %s33_s22, %s33_s22 }
   0x6   :  { %p904_p0 = scmp.ne.s32.totalorder %s33_s22, %s903_s23  ;;  %p909_p2 = scmp.lt.s32.totalorder %s903_s23, %s903_s23 }
   0x8   :  { %p910_p3 = por %p909_p2, %p908_p1 }
   0xa   :  { %p911_p4 = pnand %p910_p3, %p904_p0 }
   0xc   :  { %914 = shalt.err (!%p911_p4)
}
   0xd   :  { %s1004_s24 = smov 128   ;;  %s1005_s25 = smov 8  }
   0xe   :  { %38 = dma.hbm_to_vmem [thread:$0]  %s1247_s1, 1024, %s33_s22, [#allocation7], %s1004_s24, %s1004_s24, %s1005_s25  }
   0xf   :  { %s1006_s28 = smov [#allocation3]  }
  0x10   :  { %s20_s29 = sshll.u32 %s1006_s28, 4  ;;  %s21_s29 = int_to_ptr.vmem [resolvable:$true] %s20_s29 }
  0x11   :  { %s923_s30 = scalar_lea.vmem %s21_s29, 512  ;;  %p928_p6 = scmp.lt.s32.totalorder %s21_s29, %s21_s29 }
  0x12   :  { %p924_p5 = scmp.ne.s32.totalorder %s21_s29, %s923_s30  ;;  %p929_p7 = scmp.lt.s32.totalorder %s923_s30, %s923_s30 }
  0x14   :  { %p930_p8 = por %p929_p7, %p928_p6 }
  0x16   :  { %p931_p9 = pnand %p930_p8, %p924_p5 }
  0x18   :  { %934 = shalt.err (!%p931_p9)
}
  0x19   :  { %s1007_s7 = smov 64   ;;  %s1008_s8 = smov 4  }
  0x1a   :  { %26 = dma.hbm_to_vmem [thread:$0]  %s1246_s0, 512, %s21_s29, [#allocation4], %s1007_s7, %s1007_s7, %s1008_s8  }
  0x1b   :  { %s1009_s11 = smov [#allocation8]   ;;  %s1010_s12 = smov [#allocation9]  }
  0x1c   :  { %s44_s1 = sshll.u32 %s1009_s11, 4  ;;  %s56_s13 = sshll.u32 %s1010_s12, 4  ;;  %s45_s1 = int_to_ptr.vmem [resolvable:$true] %s44_s1  ;;  %s57_s13 = int_to_ptr.vmem [resolvable:$true] %s56_s13 }
  0x1d   :  { %s943_s14 = scalar_lea.vmem %s45_s1, 1024  ;;  %p948_p11 = scmp.lt.s32.totalorder %s45_s1, %s45_s1 }
  0x1e   :  { %p944_p10 = scmp.ne.s32.totalorder %s45_s1, %s943_s14  ;;  %p949_p12 = scmp.lt.s32.totalorder %s943_s14, %s943_s14 }
  0x20   :  { %p950_p13 = por %p949_p12, %p948_p11 }
  0x22   :  { %p951_p0 = pnand %p950_p13, %p944_p10 }
  0x24   :  { %954 = shalt.err (!%p951_p0)
}
  0x25   :  { %50 = dma.hbm_to_vmem [thread:$0]  %s1248_s2, 1024, %s45_s1, [#allocation7], %s1004_s24, %s1004_s24, %s1005_s25  }
  0x26   :  { %s963_s0 = scalar_lea.vmem %s57_s13, 512  ;;  %p968_p2 = scmp.lt.s32.totalorder %s57_s13, %s57_s13 }
  0x27   :  { %p964_p1 = scmp.ne.s32.totalorder %s57_s13, %s963_s0  ;;  %p969_p3 = scmp.lt.s32.totalorder %s963_s0, %s963_s0 }
  0x29   :  { %p970_p4 = por %p969_p3, %p968_p2 }
  0x2b   :  { %p971_p5 = pnand %p970_p4, %p964_p1 }
  0x2d   :  { %974 = shalt.err (!%p971_p5)
}
  0x2e   :  { %62 = dma.hbm_to_vmem [thread:$0]  %s1249_s3, 512, %s57_s13, [#allocation10], %s1007_s7, %s1007_s7, %s1008_s8  }
  0x2f   :  { %995 = dma.done.wait [#allocation4], 512  }
  0x30   :  { %996 = vsyncadd [#allocation4], 4294966784 }
  0x31   :  { %997 = dma.done.wait [#allocation7], 2048  }
  0x32   :  { %998 = vsyncadd [#allocation7], 4294965248 }
  0x33   :  { %999 = dma.done.wait [#allocation10], 512  }
  0x34   :  { %1000 = vsyncadd [#allocation10], 4294966784  ;;  %v84_v0 = vld [vmem:[#allocation6] sm:$0xff]  ;;  %v85_v1 = vld [vmem:[#allocation6 + $0x8] sm:$0xff]  ;;  %vm108_vm0 = vcmask 523264   ;;  %vm194_vm1 = vcmask 519168  }
  0x35   :  { %v86_v2 = vld [vmem:[#allocation6 + $0x10] sm:$0xff]  ;;  %v87_v3 = vld [vmem:[#allocation6 + $0x18] sm:$0xff]  ;;  %v88_v4 = vld [vmem:[#allocation6 + $0x20] sm:$0xff]  ;;  %v92_v6 = vmax.f32 %v84_v0, 0.0  ;;  %v93_v7 = vmax.f32 %v85_v1, 0.0  ;;  %vm251_vm2 = vcmask 1043968  }
  0x36   :  { %v89_v5 = vld [vmem:[#allocation6 + $0x28] sm:$0xff]  ;;  %v94_v8 = vmax.f32 %v86_v2, 0.0  ;;  %v90_v9 = vld [vmem:[#allocation6 + $0x30] sm:$0xff]  ;;  %v91_v10 = vld [vmem:[#allocation6 + $0x38] sm:$0xff]  ;;  %v95_v11 = vmax.f32 %v87_v3, 0.0  ;;  %v96_v12 = vmax.f32 %v88_v4, 0.0 }
  0x37   :  { %v97_v13 = vmax.f32 %v89_v5, 0.0  ;;  %v98_v14 = vmax.f32 %v90_v9, 0.0  ;;  %v99_v15 = vmax.f32 %v91_v10, 0.0  ;;  %v1069_v16 = vadd.f32 1e-07, %v92_v6 }
  0x38   :  { %v1071_v17 = vadd.f32 1e-07, %v93_v7  ;;  %v1073_v18 = vadd.f32 1e-07, %v94_v8  ;;  %v1075_v19 = vadd.f32 1e-07, %v95_v11 }
  0x39   :  { %v104_v20 = vadd.f32 1e-07, %v96_v12  ;;  %v1077_v21 = vadd.f32 1e-07, %v97_v13  ;;  %v106_v22 = vadd.f32 1e-07, %v98_v14 }
  0x3a   :  { %v107_v23 = vadd.f32 1e-07, %v99_v15  ;;  %v109_v24 = vsel %vm108_vm0, %v1069_v16, -inf  ;;  %v110_v25 = vsel %vm108_vm0, %v1071_v17, -inf  ;;  %v111_v26 = vsel %vm108_vm0, %v1073_v18, -inf }
  0x3b   :  { %v112_v27 = vsel %vm108_vm0, %v1075_v19, -inf  ;;  %v113_v28 = vsel %vm108_vm0, %v104_v20, -inf  ;;  %v115_v29 = vsel %vm108_vm0, %v1077_v21, -inf  ;;  %v117_v30 = vsel %vm108_vm0, %v106_v22, -inf }
  0x3c   :  { %v119_v31 = vsel %vm108_vm0, %v107_v23, -inf  ;;  %v114_v32 = vmax.f32 %v109_v24, %v113_v28  ;;  %v116_v33 = vmax.f32 %v110_v25, %v115_v29  ;;  %v118_v34 = vmax.f32 %v111_v26, %v117_v30 }
  0x3d   :  { %v120_v35 = vmax.f32 %v112_v27, %v119_v31 }
  0x3e   :  { %v121_v36 = vmax.f32 %v114_v32, %v116_v33 }
  0x3f   :  { %v122_v37 = vmax.f32 %v118_v34, %v120_v35 }
  0x41   :  { %v123_v38 = vmax.f32 %v121_v36, %v122_v37 }
  0x43   :  { %v124_v39 = vrot.slane %v123_v38, 4 }
  0x45   :  { %v125_v40 = vmax.f32 %v123_v38, %v124_v39 }
  0x47   :  { %v126_v41 = vrot.slane %v125_v40, 2 }
  0x49   :  { %v127_v42 = vmax.f32 %v125_v40, %v126_v41 }
  0x4b   :  { %v128_v43 = vrot.slane %v127_v42, 1 }
  0x4d   :  { %v129_v44 = vmax.f32 %v127_v42, %v128_v43  ;;  %v856_v42 = vld [vmem:[#allocation3 + $0x8] sm:$0xff]   ;;  %v857_v43 = vld [vmem:[#allocation3 + $0x10] sm:$0xff]  }
  0x4f   :  { %v136_v45 = vsub.f32 %v106_v22, %v129_v44  ;;  %v134_v46 = vsub.f32 %v104_v20, %v129_v44  ;;  %v137_v47 = vsub.f32 %v107_v23, %v129_v44  ;;  %v135_v48 = vsub.f32 %v1077_v21, %v129_v44 }
  0x50   :  { %v133_v49 = vsub.f32 %v1075_v19, %v129_v44  ;;  %v132_v50 = vsub.f32 %v1073_v18, %v129_v44  ;;  %v131_v54 = vsub.f32 %v1071_v17, %v129_v44  ;;  %v130_v56 = vsub.f32 %v1069_v16, %v129_v44  ;;  %v858_v44 = vld [vmem:[#allocation3 + $0x18] sm:$0xff]  }
  0x51   :  { %v150_v51 = vmul.f32 1.442695, %v136_v45  ;;  %v146_v52 = vmul.f32 1.442695, %v134_v46  ;;  %v152_v53 = vmul.f32 1.442695, %v137_v47 }
  0x52   :  { %v148_v55 = vmul.f32 1.442695, %v135_v48  ;;  %v144_v57 = vmul.f32 1.442695, %v133_v49  ;;  %v142_v58 = vmul.f32 1.442695, %v132_v50 }
  0x53   :  { %863 = vpow2.f32 %v150_v51  ;;  %v140_v59 = vmul.f32 1.442695, %v131_v54  ;;  %v138_v60 = vmul.f32 1.442695, %v130_v56 }
  0x54   :  { %865 = vpow2.f32 %v146_v52 }
  0x55   :  { %867 = vpow2.f32 %v152_v53 }
  0x56   :  { %869 = vpow2.f32 %v148_v55 }
  0x57   :  { %871 = vpow2.f32 %v144_v57 }
  0x58   :  { %873 = vpow2.f32 %v142_v58 }
  0x59   :  { %875 = vpow2.f32 %v140_v59 }
  0x5a   :  { %877 = vpow2.f32 %v138_v60 }
  0x60   :  { %v864_v61 = vpop.eup %863 }
  0x61   :  { %v866_v62 = vpop.eup %865  ;;  %v792_v63 = vpack.c.bf16 %v864_v61, %v864_v61  ;;  %v160_v0 = vmul.f32 %v864_v61, %v106_v22 }
  0x62   :  { %v868_v1 = vpop.eup %867  ;;  %v790_v2 = vpack.c.bf16 %v866_v62, %v866_v62  ;;  %v158_v3 = vmul.f32 %v866_v62, %v104_v20 }
  0x63   :  { %v870_v4 = vpop.eup %869  ;;  %239 = vrot.lane.b32.xlu0 %v792_v63, %s1007_s7  ;;  %v793_v5 = vpack.c.bf16 %v868_v1, %v868_v1  ;;  %v784_v6 = vpack.c.bf16 %v160_v0, %v160_v0  ;;  %v161_v7 = vmul.f32 %v868_v1, %v107_v23 }
  0x64   :  { %v872_v8 = vpop.eup %871  ;;  %235 = vrot.lane.b32.xlu1 %v790_v2, %s1007_s7  ;;  %v791_v9 = vpack.c.bf16 %v870_v4, %v870_v4  ;;  %v782_v10 = vpack.c.bf16 %v158_v3, %v158_v3  ;;  %v159_v11 = vmul.f32 %v870_v4, %v1077_v21  ;;  %v502_v4 = vld [vmem:[#allocation8] sm:$0xff] }
  0x65   :  { %v874_v12 = vpop.eup %873  ;;  %201 = vst.msk [vmem:[#allocation2 + $0x18] sm:$0xf] %vm194_vm1, %v784_v6  ;;  %v785_v13 = vpack.c.bf16 %v161_v7, %v161_v7  ;;  %v157_v14 = vmul.f32 %v872_v8, %v1075_v19  ;;  %v789_v26 = vpack.c.bf16 %v872_v8, %v872_v8  ;;  %v504_v6 = vld [vmem:[#allocation8 + $0x10] sm:$0xff]  ;;  %v503_v7 = vld [vmem:[#allocation8 + $0x8] sm:$0xff]  ;;  %v506_v8 = vld [vmem:[#allocation8 + $0x20] sm:$0xff] }
  0x66   :  { %v876_v15 = vpop.eup %875  ;;  %199 = vst.msk [vmem:[#allocation2 + $0x10] sm:$0xf] %vm194_vm1, %v782_v10  ;;  %v783_v20 = vpack.c.bf16 %v159_v11, %v159_v11  ;;  %v156_v22 = vmul.f32 %v874_v12, %v1073_v18  ;;  %v788_v24 = vpack.c.bf16 %v874_v12, %v874_v12  ;;  %v507_v10 = vld [vmem:[#allocation8 + $0x28] sm:$0xff] }
  0x67   :  { %v878_v23 = vpop.eup %877  ;;  %241 = vrot.lane.b32.xlu0 %v793_v5, %s1007_s7  ;;  %202 = vst.msk [vmem:[#allocation2 + $0x1c] sm:$0xf] %vm194_vm1, %v785_v13  ;;  %v781_v25 = vpack.c.bf16 %v157_v14, %v157_v14  ;;  %v155_v21 = vmul.f32 %v876_v15, %v1071_v17  ;;  %v787_v17 = vpack.c.bf16 %v876_v15, %v876_v15 }
  0x68   :  { %237 = vrot.lane.b32.xlu1 %v791_v9, %s1007_s7  ;;  %200 = vst.msk [vmem:[#allocation2 + $0x14] sm:$0xf] %vm194_vm1, %v783_v20  ;;  %v780_v19 = vpack.c.bf16 %v156_v22, %v156_v22  ;;  %v154_v27 = vmul.f32 %v878_v23, %v1069_v16  ;;  %v786_v29 = vpack.c.bf16 %v878_v23, %v878_v23  ;;  %v855_v16 = vld [vmem:[#allocation3] sm:$0xff]   ;;  %v505_v9 = vld [vmem:[#allocation8 + $0x18] sm:$0xff] }
  0x69   :  { %198 = vst.msk [vmem:[#allocation2 + $0xc] sm:$0xf] %vm194_vm1, %v781_v25  ;;  %v779_v18 = vpack.c.bf16 %v155_v21, %v155_v21  ;;  %818 = vmatprep.mubr.msk.bf16.mxu0 %vm108_vm0, %v855_v16 }
  0x6a   :  { %197 = vst.msk [vmem:[#allocation2 + $0x8] sm:$0xf] %vm194_vm1, %v780_v19  ;;  %v778_v28 = vpack.c.bf16 %v154_v27, %v154_v27 }
  0x6b   :  { %231 = vrot.lane.b32.xlu0 %v788_v24, %s1007_s7  ;;  %196 = vst.msk [vmem:[#allocation2 + $0x4] sm:$0xf] %vm194_vm1, %v779_v18 }
  0x6c   :  { %233 = vrot.lane.b32.xlu1 %v789_v26, %s1007_s7  ;;  %195 = vst.msk [vmem:[#allocation2] sm:$0xf] %vm194_vm1, %v778_v28  ;;  %v859_v28 = vld [vmem:[#allocation9 + $0x18] sm:$0xff]  }
  0x6d   :  { %826 = vmatprep.subr.bf16.mxu1 %v859_v28 }
  0x6e   :  { %827 = vmatpush3.bf16.msra.mxu1 %v859_v28 }
  0x6f   :  { %227 = vrot.lane.b32.xlu0 %v786_v29, %s1007_s7  ;;  %v860_v29 = vld [vmem:[#allocation9 + $0x10] sm:$0xff]  }
  0x70   :  { %229 = vrot.lane.b32.xlu1 %v787_v17, %s1007_s7  ;;  %v508_v17 = vld [vmem:[#allocation8 + $0x30] sm:$0xff]  ;;  %828 = vmatprep.subr.bf16.mxu1 %v860_v29 }
  0x72   :  { %829 = vmatpush3.bf16.msra.mxu1 %v860_v29 }
  0xd5   :  { %v240_v30 = vpop.permute.xlu0 %239 }
  0xd6   :  { %258 = vst.msk [vmem:[#allocation2 + $0x18] sm:$0xf] %vm251_vm2, %v240_v30  ;;  %v236_v31 = vpop.permute.xlu1 %235  ;;  %v861_v30 = vld [vmem:[#allocation9 + $0x8] sm:$0xff]  }
  0xd7   :  { %256 = vst.msk [vmem:[#allocation2 + $0x10] sm:$0xf] %vm251_vm2, %v236_v31  ;;  %v509_v31 = vld [vmem:[#allocation8 + $0x38] sm:$0xff]  ;;  %830 = vmatprep.subr.bf16.mxu1 %v861_v30 }
  0xd8   :  { %831 = vmatpush3.bf16.msra.mxu1 %v861_v30 }
  0xd9   :  { %v242_v32 = vpop.permute.xlu0 %241 }
  0xda   :  { %259 = vst.msk [vmem:[#allocation2 + $0x1c] sm:$0xf] %vm251_vm2, %v242_v32  ;;  %v238_v33 = vpop.permute.xlu1 %237 }
  0xdb   :  { %257 = vst.msk [vmem:[#allocation2 + $0x14] sm:$0xf] %vm251_vm2, %v238_v33 }
  0xdd   :  { %v232_v34 = vpop.permute.xlu0 %231 }
  0xde   :  { %v234_v35 = vpop.permute.xlu1 %233  ;;  %254 = vst.msk [vmem:[#allocation2 + $0x8] sm:$0xf] %vm251_vm2, %v232_v34 }
  0xdf   :  { %255 = vst.msk [vmem:[#allocation2 + $0xc] sm:$0xf] %vm251_vm2, %v234_v35 }
  0xe1   :  { %v851_v36 = vld [vmem:[#allocation2 + $0x18] sm:$0xff]   ;;  %v228_v37 = vpop.permute.xlu0 %227 }
  0xe2   :  { %v230_v38 = vpop.permute.xlu1 %229  ;;  %252 = vst.msk [vmem:[#allocation2] sm:$0xf] %vm251_vm2, %v228_v37  ;;  %810 = vmatprep.subr.bf16.mxu0 %v851_v36  ;;  %v852_v39 = vld [vmem:[#allocation2 + $0x10] sm:$0xff]   ;;  %v862_v37 = vld [vmem:[#allocation9] sm:$0xff]  }
  0xe3   :  { %253 = vst.msk [vmem:[#allocation2 + $0x4] sm:$0xf] %vm251_vm2, %v230_v38  ;;  %811 = vmatpush3.bf16.msra.mxu0 %v851_v36  ;;  %832 = vmatprep.subr.bf16.mxu1 %v862_v37 }
  0xe4   :  { %812 = vmatprep.subr.bf16.mxu0 %v852_v39  ;;  %833 = vmatpush3.bf16.msra.mxu1 %v862_v37 }
  0xe6   :  { %v853_v40 = vld [vmem:[#allocation2 + $0x8] sm:$0xff]  }
  0xe7   :  { %813 = vmatpush3.bf16.msra.mxu0 %v852_v39 }
  0xe8   :  { %814 = vmatprep.subr.bf16.mxu0 %v853_v40 }
  0xea   :  { %v854_v41 = vld [vmem:[#allocation2] sm:$0xff]  }
  0xeb   :  { %815 = vmatpush3.bf16.msra.mxu0 %v853_v40 }
  0xec   :  { %816 = vmatprep.subr.bf16.mxu0 %v854_v41 }
  0xef   :  { %817 = vmatpush3.bf16.msra.mxu0 %v854_v41 }
  0xf2   :  { %819 = vmatmul.mubr.msk.bf16.vlgmr.msra.gmra.mxu0 %vm108_vm0, %v856_v42 }
  0xf3   :  { %822 = vmatprep.mubr.msk.bf16.mxu0 %vm108_vm0, %v857_v43 }
  0xfa   :  { %823 = vmatmul.mubr.msk.bf16.gmra.mxu0 %vm108_vm0, %v858_v44 }
 0x1b2   :  { %v1130_v45 = vpop.f32.mrf.mxu0 }
 0x1b3   :  { %vm400_vm3 = vcmp.gt.f32.partialorder %v1130_v45, 0.0 }
 0x1b4   :  { %v1133_v46 = vpop.f32.mrf.mxu0  ;;  %v408_v49 = vsel %vm400_vm3, %v1130_v45, 1.0 }
 0x1b5   :  { %vm398_vm4 = vcmp.gt.f32.partialorder %v1133_v46, 0.0 }
 0x1b6   :  { %v406_v47 = vsel %vm398_vm4, %v1133_v46, 1.0  ;;  %v1139_v48 = vpop.f32.mrf.mxu0 }
 0x1b7   :  { %879 = vrcp.f32 %v406_v47  ;;  %vm401_vm5 = vcmp.gt.f32.partialorder %v1139_v48, 0.0 }
 0x1b8   :  { %v1145_v50 = vpop.f32.mrf.mxu0  ;;  %881 = vrcp.f32 %v408_v49  ;;  %v409_v53 = vsel %vm401_vm5, %v1139_v48, 1.0 }
 0x1b9   :  { %vm399_vm6 = vcmp.gt.f32.partialorder %v1145_v50, 0.0 }
 0x1ba   :  { %v407_v51 = vsel %vm399_vm6, %v1145_v50, 1.0  ;;  %v1151_v52 = vpop.f32.mrf.mxu0 }
 0x1bb   :  { %883 = vrcp.f32 %v407_v51  ;;  %vm404_vm7 = vcmp.gt.f32.partialorder %v1151_v52, 0.0 }
 0x1bc   :  { %v1157_v54 = vpop.f32.mrf.mxu0  ;;  %885 = vrcp.f32 %v409_v53  ;;  %v412_v57 = vsel %vm404_vm7, %v1151_v52, 1.0 }
 0x1bd   :  { %vm402_vm8 = vcmp.gt.f32.partialorder %v1157_v54, 0.0 }
 0x1be   :  { %v410_v55 = vsel %vm402_vm8, %v1157_v54, 1.0  ;;  %v1163_v56 = vpop.f32.mrf.mxu0 }
 0x1bf   :  { %887 = vrcp.f32 %v410_v55  ;;  %vm405_vm9 = vcmp.gt.f32.partialorder %v1163_v56, 0.0 }
 0x1c0   :  { %v1168_v58 = vpop.f32.mrf.mxu0  ;;  %889 = vrcp.f32 %v412_v57  ;;  %v413_v61 = vsel %vm405_vm9, %v1163_v56, 1.0 }
 0x1c1   :  { %vm403_vm10 = vcmp.gt.f32.partialorder %v1168_v58, 0.0 }
 0x1c2   :  { %v411_v59 = vsel %vm403_vm10, %v1168_v58, 1.0 }
 0x1c3   :  { %891 = vrcp.f32 %v411_v59 }
 0x1c4   :  { %v880_v60 = vpop.eup %879  ;;  %893 = vrcp.f32 %v413_v61 }
 0x1c5   :  { %430 = vrot.lane.b32.xlu0 %v880_v60, %s1007_s7  ;;  %v882_v62 = vpop.eup %881 }
 0x1c8   :  { %v884_v63 = vpop.eup %883 }
 0x1c9   :  { %434 = vrot.lane.b32.xlu0 %v882_v62, %s1007_s7  ;;  %432 = vrot.lane.b32.xlu1 %v884_v63, %s1007_s7  ;;  %v886_v0 = vpop.eup %885 }
 0x1cc   :  { %v888_v1 = vpop.eup %887 }
 0x1cd   :  { %436 = vrot.lane.b32.xlu1 %v886_v0, %s1007_s7  ;;  %438 = vrot.lane.b32.xlu0 %v888_v1, %s1007_s7  ;;  %v890_v2 = vpop.eup %889 }
 0x1d0   :  { %v892_v3 = vpop.eup %891 }
 0x1d1   :  { %442 = vrot.lane.b32.xlu0 %v890_v2, %s1007_s7  ;;  %440 = vrot.lane.b32.xlu1 %v892_v3, %s1007_s7  ;;  %v894_v5 = vpop.eup %893 }
 0x1d5   :  { %444 = vrot.lane.b32.xlu1 %v894_v5, %s1007_s7  ;;  %518 = vrot.lane.b32.xlu0 %v502_v4, %s1007_s7 }
 0x1d9   :  { %522 = vrot.lane.b32.xlu0 %v504_v6, %s1007_s7  ;;  %520 = vrot.lane.b32.xlu1 %v503_v7, %s1007_s7 }
 0x1dd   :  { %526 = vrot.lane.b32.xlu0 %v506_v8, %s1007_s7  ;;  %524 = vrot.lane.b32.xlu1 %v505_v9, %s1007_s7  ;;  %v776_v9 = vld [vmem:[%s1250_s4] ss:$0 sm:$0xff]  ;;  %s1011_s4 = smov [#allocation11]  }
 0x1e1   :  { %528 = vrot.lane.b32.xlu1 %v507_v10, %s1007_s7 }
 0x237   :  { %v431_v11 = vpop.permute.xlu0 %430 }
 0x238   :  { %v454_v22 = vmul.f32 %v431_v11, %v1133_v46  ;;  %v777_v11 = vld [vmem:[%s1251_s5] ss:$0 sm:$0xff]  ;;  %s726_s5 = sshll.u32 %s1011_s4, 4  ;;  %s727_s5 = int_to_ptr.vmem [resolvable:$true] %s726_s5 }
 0x239   :  { %s975_s21 = scalar_lea.vmem %s727_s5, 1024  ;;  %p980_p7 = scmp.lt.s32.totalorder %s727_s5, %s727_s5 }
 0x23a   :  { %p976_p6 = scmp.ne.s32.totalorder %s727_s5, %s975_s21  ;;  %p981_p8 = scmp.lt.s32.totalorder %s975_s21, %s975_s21 }
 0x23b   :  { %v435_v12 = vpop.permute.xlu0 %434  ;;  %v433_v13 = vpop.permute.xlu1 %432 }
 0x23c   :  { %v456_v14 = vmul.f32 %v1130_v45, %v435_v12  ;;  %v455_v21 = vmul.f32 %v433_v13, %v1145_v50  ;;  %p982_p9 = por %p981_p8, %p980_p7 }
 0x23e   :  { %474 = vrot.lane.b32.xlu0 %v456_v14, %s1007_s7  ;;  %p983_p10 = pnand %p982_p9, %p976_p6 }
 0x23f   :  { %v437_v15 = vpop.permute.xlu1 %436  ;;  %v439_v20 = vpop.permute.xlu0 %438 }
 0x240   :  { %v457_v23 = vmul.f32 %v1139_v48, %v437_v15  ;;  %v458_v27 = vmul.f32 %v439_v20, %v1157_v54 }
 0x242   :  { %470 = vrot.lane.b32.xlu0 %v454_v22, %s1007_s7  ;;  %476 = vrot.lane.b32.xlu1 %v457_v23, %s1007_s7 }
 0x243   :  { %v443_v24 = vpop.permute.xlu0 %442  ;;  %v441_v25 = vpop.permute.xlu1 %440 }
 0x244   :  { %v460_v26 = vmul.f32 %v1151_v52, %v443_v24  ;;  %v459_v16 = vmul.f32 %v441_v25, %v1168_v58 }
 0x246   :  { %482 = vrot.lane.b32.xlu0 %v460_v26, %s1007_s7  ;;  %472 = vrot.lane.b32.xlu1 %v455_v21, %s1007_s7 }
 0x247   :  { %v445_v19 = vpop.permute.xlu1 %444  ;;  %v519_v32 = vpop.permute.xlu0 %518 }
 0x248   :  { %v461_v18 = vmul.f32 %v1163_v56, %v445_v19 }
 0x24a   :  { %478 = vrot.lane.b32.xlu0 %v458_v27, %s1007_s7  ;;  %484 = vrot.lane.b32.xlu1 %v461_v18, %s1007_s7 }
 0x24b   :  { %v521_v33 = vpop.permute.xlu1 %520  ;;  %v523_v34 = vpop.permute.xlu0 %522 }
 0x24e   :  { %530 = vrot.lane.b32.xlu0 %v508_v17, %s1007_s7  ;;  %480 = vrot.lane.b32.xlu1 %v459_v16, %s1007_s7 }
 0x24f   :  { %v525_v35 = vpop.permute.xlu1 %524  ;;  %v527_v36 = vpop.permute.xlu0 %526 }
 0x252   :  { %532 = vrot.lane.b32.xlu1 %v509_v31, %s1007_s7 }
 0x253   :  { %v529_v38 = vpop.permute.xlu1 %528 }
 0x2b0   :  { %v475_v39 = vpop.permute.xlu0 %474 }
 0x2b1   :  { %v496_v40 = vsel %vm400_vm3, %v475_v39, 0.0 }
 0x2b2   :  { %v544_v44 = vadd.f32 %v523_v34, %v496_v40 }
 0x2b4   :  { %v471_v41 = vpop.permute.xlu0 %470  ;;  %v477_v42 = vpop.permute.xlu1 %476 }
 0x2b5   :  { %v497_v43 = vsel %vm401_vm5, %v477_v42, 0.0  ;;  %v494_v49 = vsel %vm398_vm4, %v471_v41, 0.0 }
 0x2b6   :  { %v545_v47 = vadd.f32 %v525_v35, %v497_v43  ;;  %v542_v59 = vadd.f32 %v519_v32, %v494_v49 }
 0x2b8   :  { %v483_v51 = vpop.permute.xlu0 %482  ;;  %v473_v53 = vpop.permute.xlu1 %472  ;;  %v551_v55 = vpack.c.bf16 %v545_v47, %v544_v44 }
 0x2b9   :  { %v495_v57 = vsel %vm399_vm6, %v473_v53, 0.0  ;;  %v500_v2 = vsel %vm404_vm7, %v483_v51, 0.0 }
 0x2ba   :  { %v543_v60 = vadd.f32 %v521_v33, %v495_v57  ;;  %568 = vrot.lane.b32.xlu1 %v551_v55, %s1007_s7 }
 0x2bc   :  { %v479_v45 = vpop.permute.xlu0 %478  ;;  %v485_v61 = vpop.permute.xlu1 %484  ;;  %v550_v62 = vpack.c.bf16 %v543_v60, %v542_v59 }
 0x2bd   :  { %v498_v48 = vsel %vm402_vm8, %v479_v45, 0.0  ;;  %v501_v3 = vsel %vm405_vm9, %v485_v61, 0.0 }
 0x2be   :  { %566 = vrot.lane.b32.xlu0 %v550_v62, %s1007_s7  ;;  %v546_v0 = vadd.f32 %v527_v36, %v498_v48 }
 0x2c0   :  { %v481_v46 = vpop.permute.xlu1 %480  ;;  %v531_v1 = vpop.permute.xlu0 %530 }
 0x2c1   :  { %v499_v63 = vsel %vm403_vm10, %v481_v46, 0.0  ;;  %v548_v6 = vadd.f32 %v531_v1, %v500_v2 }
 0x2c2   :  { %v547_v50 = vadd.f32 %v529_v38, %v499_v63 }
 0x2c4   :  { %v533_v4 = vpop.permute.xlu1 %532  ;;  %v552_v5 = vpack.c.bf16 %v547_v50, %v546_v0 }
 0x2c5   :  { %v549_v7 = vadd.f32 %v533_v4, %v501_v3 }
 0x2c6   :  { %570 = vrot.lane.b32.xlu0 %v552_v5, %s1007_s7 }
 0x2c7   :  { %v553_v54 = vpack.c.bf16 %v549_v7, %v548_v6 }
 0x2c9   :  { %572 = vrot.lane.b32.xlu1 %v553_v54, %s1007_s7 }
 0x32c   :  { %v569_v8 = vpop.permute.xlu1 %568 }
 0x330   :  { %v567_v58 = vpop.permute.xlu0 %566 }
 0x331   :  { %834 = vmatprep.mubr.msk.bf16.mxu1 %vm108_vm0, %v567_v58 }
 0x332   :  { %835 = vmatmul.mubr.msk.bf16.vlgmr.msra.gmra.mxu1 %vm108_vm0, %v569_v8 }
 0x338   :  { %v571_v52 = vpop.permute.xlu0 %570 }
 0x339   :  { %838 = vmatprep.mubr.msk.bf16.mxu1 %vm108_vm0, %v571_v52 }
 0x33b   :  { %v573_v56 = vpop.permute.xlu1 %572 }
 0x33c   :  { %839 = vmatmul.mubr.msk.bf16.gmra.mxu1 %vm108_vm0, %v573_v56 }
 0x3f2   :  { %v836_v10 = vpop.f32.mrf.mxu1 }
 0x3f3   :  { %v684_v12 = vmul.f32 %v836_v10, %v776_v9 }
 0x3f4   :  { %v644_v13 = vpop.f32.mrf.mxu1 }
 0x3f5   :  { %v699_v14 = vadd.f32 %v777_v11, %v684_v12  ;;  %v682_v15 = vmul.f32 %v776_v9, %v644_v13 }
 0x3f6   :  { %v837_v20 = vpop.f32.mrf.mxu1 }
 0x3f7   :  { %v707_v22 = vmax.f32 %v699_v14, 0.0  ;;  %v697_v23 = vadd.f32 %v777_v11, %v682_v15  ;;  %v685_v24 = vmul.f32 %v837_v20, %v776_v9 }
 0x3f8   :  { %v647_v25 = vpop.f32.mrf.mxu1 }
 0x3f9   :  { %715 = vst [vmem:[#allocation11 + $0x10] sm:$0xff] %v707_v22  ;;  %v705_v21 = vmax.f32 %v697_v23, 0.0  ;;  %v700_v26 = vadd.f32 %v777_v11, %v685_v24  ;;  %v683_v19 = vmul.f32 %v776_v9, %v647_v25 }
 0x3fb   :  { %713 = vst [vmem:[#allocation11] sm:$0xff] %v705_v21  ;;  %v708_v27 = vmax.f32 %v700_v26, 0.0  ;;  %v698_v18 = vadd.f32 %v777_v11, %v683_v19 }
 0x3fc   :  { %v840_v28 = vpop.f32.mrf.mxu1 }
 0x3fd   :  { %716 = vst [vmem:[#allocation11 + $0x18] sm:$0xff] %v708_v27  ;;  %v706_v29 = vmax.f32 %v698_v18, 0.0  ;;  %v688_v17 = vmul.f32 %v840_v28, %v776_v9 }
 0x3fe   :  { %v660_v16 = vpop.f32.mrf.mxu1 }
 0x3ff   :  { %714 = vst [vmem:[#allocation11 + $0x8] sm:$0xff] %v706_v29  ;;  %v703_v30 = vadd.f32 %v777_v11, %v688_v17  ;;  %v686_v31 = vmul.f32 %v776_v9, %v660_v16 }
 0x400   :  { %v841_v32 = vpop.f32.mrf.mxu1 }
 0x401   :  { %v711_v33 = vmax.f32 %v703_v30, 0.0  ;;  %v701_v34 = vadd.f32 %v777_v11, %v686_v31  ;;  %v689_v35 = vmul.f32 %v841_v32, %v776_v9 }
 0x402   :  { %v663_v36 = vpop.f32.mrf.mxu1 }
 0x403   :  { %719 = vst [vmem:[#allocation11 + $0x30] sm:$0xff] %v711_v33  ;;  %v709_v37 = vmax.f32 %v701_v34, 0.0  ;;  %v704_v38 = vadd.f32 %v777_v11, %v689_v35  ;;  %v687_v39 = vmul.f32 %v776_v9, %v663_v36 }
 0x405   :  { %717 = vst [vmem:[#allocation11 + $0x20] sm:$0xff] %v709_v37  ;;  %v712_v40 = vmax.f32 %v704_v38, 0.0  ;;  %v702_v41 = vadd.f32 %v777_v11, %v687_v39 }
 0x407   :  { %720 = vst [vmem:[#allocation11 + $0x38] sm:$0xff] %v712_v40  ;;  %v710_v42 = vmax.f32 %v702_v41, 0.0 }
 0x409   :  { %718 = vst [vmem:[#allocation11 + $0x28] sm:$0xff] %v710_v42 }
 0x40a   :  { %986 = shalt.err (!%p983_p10)
}
 0x40b   :  { %732 = dma.vmem_to_hbm [thread:$0]  %s727_s5, 1024, %s1252_s6, [#allocation5], %s1004_s24, %s1004_s24, %s1005_s25  }
 0x40c   :  { %1001 = dma.done.wait [#allocation5], 1024  }
 0x40d   :  { %1002 = vsyncadd [#allocation5], 4294966272 }
 0x40e   :  { %736 = vsyncpa [#allocation4], 1 }
 0x40f   :  { %737 = vsyncpa [#allocation7], 1 }
 0x410   :  { %738 = vsyncpa [#allocation10], 1 }
 0x411   :  { %739 = vsyncpa [#allocation5], 1 }

</bundles_post_ra>
